<compile_context>
chip_gen: v6e
topology: v6e:2x2x1
jax: 0.10.0
libtpu: 0.0.40
codegen_flags: <defaults>
</compile_context>

<pallas_src>
import jax
import jax.numpy as jnp
from jax.experimental import pallas as pl
from jax.experimental.pallas import tpu as pltpu

# ---- packed-parameter slab layout (rows of a (208, 128) f32 array) ----------
# rows   0- 31 : W0 (32 x 4)  in cols 0..3          (cols 4..7 zero -> K=8 pad)
# rows  32- 63 : W1 (32 x 32) in cols 0..31
# rows  64- 95 : W2 (32 x 32) in cols 0..31
# rows  96-103 : W3 (2 x 32)  in rows 96..97, cols 0..31 (rows 98..103 zero)
# rows 104-135 : b0 broadcast to (32, 128)
# rows 136-167 : b1 broadcast to (32, 128)
# rows 168-199 : b2 broadcast to (32, 128)
# rows 200-207 : b3 broadcast to rows 200..201 (rows 202..207 zero)
SLAB_ROWS = 208
LANES = 128  # batch tile width (lane axis)


def pi_network_kernel(x_ref, p_ref, out_ref):
    # x_ref:   (8, 128)  rows 0..3 = features, batch along lanes (zero padded)
    # p_ref:   (208, 128) packed parameters (see layout above)
    # out_ref: (2, 128)  row 0 = P(class 0), row 1 = P(class 1), batch in lanes
    x = x_ref[...]

    w0 = p_ref[0:32, 0:8]        # (32, 8)  cols 4..7 zero
    w1 = p_ref[32:64, 0:32]      # (32, 32)
    w2 = p_ref[64:96, 0:32]      # (32, 32)
    w3 = p_ref[96:104, 0:32]     # (8, 32)  rows 2..7 zero
    b0 = p_ref[104:136, :]       # (32, 128) pre-broadcast
    b1 = p_ref[136:168, :]
    b2 = p_ref[168:200, :]
    b3 = p_ref[200:208, :]       # (8, 128) rows 2..7 zero

    # fc0..fc2 + ReLU   (weights-stationary: h = W @ x, batch stays in lanes)
    h = jnp.maximum(jnp.dot(w0, x, preferred_element_type=jnp.float32) + b0, 0.0)
    h = jnp.maximum(jnp.dot(w1, h, preferred_element_type=jnp.float32) + b1, 0.0)
    h = jnp.maximum(jnp.dot(w2, h, preferred_element_type=jnp.float32) + b2, 0.0)
    # fc3 (logits); rows 2..7 are exactly zero by construction.
    logits = jnp.dot(w3, h, preferred_element_type=jnp.float32) + b3  # (8, 128)

    # 2-class softmax in closed form (no cross-lane max/sum reductions):
    #   p0 = exp(l0) / (exp(l0) + exp(l1)) = 1 / (1 + exp(l1 - l0))
    d = logits[0:1, :] - logits[1:2, :]          # (1, 128), per-lane VPU sub
    p0 = 1.0 / (1.0 + jnp.exp(-d))               # EUP exp, stable for any d
    out_ref[...] = jnp.concatenate([p0, 1.0 - p0], axis=0)  # (2, 128) lane-dense


def pack_params(params):
    """Pack all weights/biases into one (208, 128) f32 slab (single DMA).

    Call once outside the per-step hot path; the slab is reused every forward.
    Weights are in PyTorch (out_features, in_features) layout, biases (out,).
    """
    slab = jnp.zeros((SLAB_ROWS, LANES), jnp.float32)
    slab = slab.at[0:32, 0:4].set(params["w0"].astype(jnp.float32))
    slab = slab.at[32:64, 0:32].set(params["w1"].astype(jnp.float32))
    slab = slab.at[64:96, 0:32].set(params["w2"].astype(jnp.float32))
    slab = slab.at[96:98, 0:32].set(params["w3"].astype(jnp.float32))
    slab = slab.at[104:136, :].set(
        jnp.broadcast_to(params["b0"].astype(jnp.float32)[:, None], (32, LANES)))
    slab = slab.at[136:168, :].set(
        jnp.broadcast_to(params["b1"].astype(jnp.float32)[:, None], (32, LANES)))
    slab = slab.at[168:200, :].set(
        jnp.broadcast_to(params["b2"].astype(jnp.float32)[:, None], (32, LANES)))
    slab = slab.at[200:202, :].set(
        jnp.broadcast_to(params["b3"].astype(jnp.float32)[:, None], (2, LANES)))
    return slab


def pi_network_forward(x, packed_params):
    """x: (B, 4) float32. packed_params: (208, 128) slab from pack_params.

    Returns (B, 2) action probabilities (softmax over dim=1).
    """
    B = x.shape[0]
    n_tiles = (B + LANES - 1) // LANES
    Bp = n_tiles * LANES

    # Layout plumbing (wrapper side): transpose to batch-along-lanes and pad
    # features 4 -> 8 sublanes, batch B -> Bp lanes.
    xT = jnp.zeros((8, Bp), jnp.float32).at[:4, :B].set(x.astype(jnp.float32).T)

    out = pl.pallas_call(
        pi_network_kernel,
        out_shape=jax.ShapeDtypeStruct((2, Bp), jnp.float32),
        grid=(n_tiles,),
        in_specs=[
            # x: one (8, 128) batch tile per grid step (pipelined for large B).
            pl.BlockSpec((8, LANES), lambda i: (0, i)),
            # params: constant block index -> DMA'd once, VMEM-resident.
            pl.BlockSpec((SLAB_ROWS, LANES), lambda i: (0, 0)),
        ],
        out_specs=pl.BlockSpec((2, LANES), lambda i: (0, i)),
        compiler_params=pltpu.CompilerParams(
            dimension_semantics=("parallel",)),  # shards tiles across TCs on v7x
    )(xT, packed_params)

    # Back to the PyTorch-facing (B, 2) layout.
    return out[:, :B].T


def init_params(key):
    """nn.Linear-style init; weights in PyTorch (out, in) layout, biases (out,)."""
    dims = [(4, 32), (32, 32), (32, 32), (32, 2)]
    params = {}
    keys = jax.random.split(key, 2 * len(dims))
    for i, (fi, fo) in enumerate(dims):
        bound = 1.0 / (fi ** 0.5)
        params[f"w{i}"] = jax.random.uniform(
            keys[2 * i], (fo, fi), jnp.float32, -bound, bound)
        params[f"b{i}"] = jax.random.uniform(
            keys[2 * i + 1], (fo,), jnp.float32, -bound, bound)
    return params


def reference_forward(x, params):
    h = jnp.maximum(x @ params["w0"].T + params["b0"], 0.0)
    h = jnp.maximum(h @ params["w1"].T + params["b1"], 0.0)
    h = jnp.maximum(h @ params["w2"].T + params["b2"], 0.0)
    logits = h @ params["w3"].T + params["b3"]
    return jax.nn.softmax(logits, axis=1)


if __name__ == "__main__":
    key = jax.random.PRNGKey(0)
    k_param, k_x = jax.random.split(key)
    params = init_params(k_param)
    packed = pack_params(params)  # pack once; reused across all forward calls

    B = 8  # CartPole observation dim = 4, 2 actions
    x = jax.random.normal(k_x, (B, 4), jnp.float32)

    out = pi_network_forward(x, packed)
    out = jax.block_until_ready(out)

    ref = reference_forward(x, params)
    assert out.shape == (B, 2)
    assert jnp.allclose(out, ref, atol=1e-5, rtol=1e-5), "mismatch vs reference"
    assert jnp.allclose(jnp.sum(out, axis=1), 1.0, atol=1e-5), "rows must sum to 1"

    # TODO(synk): for per-env-step RL rollouts, amortize further by looping the
    # policy step inside one pallas_call (grid over steps) instead of one call
    # per step — the slab already supports weight residency across tiles.

    print("KERNEL_OK")
</pallas_src>

<mosaic_0001>
module attributes {stable_mosaic.version = 11 : i64} {
  func.func @pi_network_kernel(%arg0: i32, %arg1: memref<8x128xf32, #tpu.memory_space<vmem>>, %arg2: memref<208x128xf32, #tpu.memory_space<vmem>>, %arg3: memref<2x128xf32, #tpu.memory_space<vmem>>) attributes {dimension_semantics = [#tpu.dimension_semantics<parallel>], iteration_bounds = array<i64: 1>, scalar_prefetch = 0 : i64, scratch_operands = 0 : i64, tpu.core_type = #tpu.core_type<tc>, window_params = [{transform_indices = @transform_0, window_bounds = array<i64: 8, 128>}, {pipeline_mode = #tpu.pipeline_mode<synchronous>, transform_indices = @transform_1, window_bounds = array<i64: 208, 128>}, {transform_indices = @transform_2, window_bounds = array<i64: 2, 128>}]} {
    %c0 = arith.constant 0 : index
    %c0_0 = arith.constant 0 : index
    %0 = vector.load %arg1[%c0, %c0_0] : memref<8x128xf32, #tpu.memory_space<vmem>>, vector<8x128xf32>
    %c0_1 = arith.constant 0 : index
    %c0_2 = arith.constant 0 : index
    %1 = vector.load %arg2[%c0_1, %c0_2] : memref<208x128xf32, #tpu.memory_space<vmem>>, vector<32x8xf32>
    %c32 = arith.constant 32 : index
    %c0_3 = arith.constant 0 : index
    %2 = vector.load %arg2[%c32, %c0_3] : memref<208x128xf32, #tpu.memory_space<vmem>>, vector<32x32xf32>
    %c64 = arith.constant 64 : index
    %c0_4 = arith.constant 0 : index
    %3 = vector.load %arg2[%c64, %c0_4] : memref<208x128xf32, #tpu.memory_space<vmem>>, vector<32x32xf32>
    %c96 = arith.constant 96 : index
    %c0_5 = arith.constant 0 : index
    %4 = vector.load %arg2[%c96, %c0_5] : memref<208x128xf32, #tpu.memory_space<vmem>>, vector<8x32xf32>
    %c104 = arith.constant 104 : index
    %c0_6 = arith.constant 0 : index
    %5 = vector.load %arg2[%c104, %c0_6] : memref<208x128xf32, #tpu.memory_space<vmem>>, vector<32x128xf32>
    %c136 = arith.constant 136 : index
    %c0_7 = arith.constant 0 : index
    %6 = vector.load %arg2[%c136, %c0_7] : memref<208x128xf32, #tpu.memory_space<vmem>>, vector<32x128xf32>
    %c168 = arith.constant 168 : index
    %c0_8 = arith.constant 0 : index
    %7 = vector.load %arg2[%c168, %c0_8] : memref<208x128xf32, #tpu.memory_space<vmem>>, vector<32x128xf32>
    %c200 = arith.constant 200 : index
    %c0_9 = arith.constant 0 : index
    %8 = vector.load %arg2[%c200, %c0_9] : memref<208x128xf32, #tpu.memory_space<vmem>>, vector<8x128xf32>
    %cst = arith.constant dense<0.000000e+00> : vector<32x128xf32>
    %9 = tpu.matmul %1, %0, %cst {dimension_numbers = #tpu.dot_dimension_numbers<[1], [0], [0], [1], [0, 0, 1, 1], [], []>} : vector<32x8xf32>, vector<8x128xf32>, vector<32x128xf32> -> vector<32x128xf32>
    %10 = arith.addf %9, %5 : vector<32x128xf32>
    %cst_10 = arith.constant 0.000000e+00 : f32
    %11 = vector.broadcast %cst_10 : f32 to vector<32x128xf32>
    %12 = arith.maximumf %10, %11 : vector<32x128xf32>
    %cst_11 = arith.constant dense<0.000000e+00> : vector<32x128xf32>
    %13 = tpu.matmul %2, %12, %cst_11 {dimension_numbers = #tpu.dot_dimension_numbers<[1], [0], [0], [1], [0, 0, 1, 1], [], []>} : vector<32x32xf32>, vector<32x128xf32>, vector<32x128xf32> -> vector<32x128xf32>
    %14 = arith.addf %13, %6 : vector<32x128xf32>
    %cst_12 = arith.constant 0.000000e+00 : f32
    %15 = vector.broadcast %cst_12 : f32 to vector<32x128xf32>
    %16 = arith.maximumf %14, %15 : vector<32x128xf32>
    %cst_13 = arith.constant dense<0.000000e+00> : vector<32x128xf32>
    %17 = tpu.matmul %3, %16, %cst_13 {dimension_numbers = #tpu.dot_dimension_numbers<[1], [0], [0], [1], [0, 0, 1, 1], [], []>} : vector<32x32xf32>, vector<32x128xf32>, vector<32x128xf32> -> vector<32x128xf32>
    %18 = arith.addf %17, %7 : vector<32x128xf32>
    %cst_14 = arith.constant 0.000000e+00 : f32
    %19 = vector.broadcast %cst_14 : f32 to vector<32x128xf32>
    %20 = arith.maximumf %18, %19 : vector<32x128xf32>
    %cst_15 = arith.constant dense<0.000000e+00> : vector<8x128xf32>
    %21 = tpu.matmul %4, %20, %cst_15 {dimension_numbers = #tpu.dot_dimension_numbers<[1], [0], [0], [1], [0, 0, 1, 1], [], []>} : vector<8x32xf32>, vector<32x128xf32>, vector<8x128xf32> -> vector<8x128xf32>
    %22 = arith.addf %21, %8 : vector<8x128xf32>
    %23 = vector.extract_strided_slice %22 {offsets = [0, 0], sizes = [1, 128], strides = [1, 1]} : vector<8x128xf32> to vector<1x128xf32>
    %24 = vector.extract_strided_slice %22 {offsets = [1, 0], sizes = [1, 128], strides = [1, 1]} : vector<8x128xf32> to vector<1x128xf32>
    %25 = arith.subf %23, %24 : vector<1x128xf32>
    %cst_16 = arith.constant 0.000000e+00 : f32
    %26 = vector.broadcast %cst_16 : f32 to vector<1x128xf32>
    %27 = arith.subf %26, %25 : vector<1x128xf32>
    %28 = math.exp %27 : vector<1x128xf32>
    %cst_17 = arith.constant 1.000000e+00 : f32
    %29 = vector.broadcast %cst_17 : f32 to vector<1x128xf32>
    %30 = arith.addf %29, %28 : vector<1x128xf32>
    %cst_18 = arith.constant 1.000000e+00 : f32
    %31 = vector.broadcast %cst_18 : f32 to vector<1x128xf32>
    %32 = arith.divf %31, %30 : vector<1x128xf32>
    %cst_19 = arith.constant 1.000000e+00 : f32
    %33 = vector.broadcast %cst_19 : f32 to vector<1x128xf32>
    %34 = arith.subf %33, %32 : vector<1x128xf32>
    %35 = tpu.concatenate %32, %34 in 0 : vector<1x128xf32>, vector<1x128xf32> -> vector<2x128xf32>
    %c0_20 = arith.constant 0 : index
    %c0_21 = arith.constant 0 : index
    %36 = vector.load %arg3[%c0_20, %c0_21] : memref<2x128xf32, #tpu.memory_space<vmem>>, vector<2x128xf32>
    tpu.vector_store %arg3[%c0_20, %c0_21], %35 {strides = array<i32>} : memref<2x128xf32, #tpu.memory_space<vmem>>, vector<2x128xf32>,
    return
  }
  func.func @transform_0(%arg0: i32) -> (i32, i32) {
    %c0_i32 = arith.constant 0 : i32
    %c0_i32_0 = arith.constant 0 : i32
    return %c0_i32, %arg0 : i32, i32
  }
  func.func @transform_1(%arg0: i32) -> (i32, i32) {
    %c0_i32 = arith.constant 0 : i32
    %c0_i32_0 = arith.constant 0 : i32
    %c0_i32_1 = arith.constant 0 : i32
    return %c0_i32, %c0_i32_0 : i32, i32
  }
  func.func @transform_2(%arg0: i32) -> (i32, i32) {
    %c0_i32 = arith.constant 0 : i32
    %c0_i32_0 = arith.constant 0 : i32
    return %c0_i32, %arg0 : i32, i32
  }
}

</mosaic_0001>

<bundles_post_ra>
// kernel: tpu_custom_call.1
= control target key start
LH: loop header
LB: loop body
LE: loop exit
PB: predicated region body
PF: predicated region fallthrough
CT: control target
= control target key end

     0   :  { %7 = vsyncpa [#allocation3], 0  ;;  %s679_s0 = inlined_call_operand.hbm [shape: f32[8,128], index: 0, kind: input, shape index: {}]   ;;  %s680_s1 = inlined_call_operand.hbm [shape: f32[208,128], index: 1, kind: input, shape index: {}]   ;;  %s681_s2 = inlined_call_operand.hbm [shape: f32[2,128], index: 2, kind: output, shape index: {}]  }
   0x1   :  { %8 = vsyncpa [#allocation6], 0 }
   0x2   :  { %9 = vsyncpa [#allocation4], 0  ;;  %s639_s9 = smov [#allocation2]   ;;  %s640_s11 = smov [#allocation5]  }
   0x3   :  { %s16_s10 = sshll.u32 %s639_s9, 4  ;;  %s25_s12 = sshll.u32 %s640_s11, 4  ;;  %s17_s10 = int_to_ptr.vmem [resolvable:$true] %s16_s10  ;;  %s26_s12 = int_to_ptr.vmem [resolvable:$true] %s25_s12 }
   0x4   :  { %s581_s13 = scalar_lea.vmem %s17_s10, 128  ;;  %p586_p1 = scmp.lt.s32.totalorder %s17_s10, %s17_s10 }
   0x5   :  { %p582_p0 = scmp.ne.s32.totalorder %s17_s10, %s581_s13  ;;  %p587_p2 = scmp.lt.s32.totalorder %s581_s13, %s581_s13 }
   0x7   :  { %p588_p3 = por %p587_p2, %p586_p1 }
   0x9   :  { %p589_p4 = pnand %p588_p3, %p582_p0 }
   0xb   :  { %592 = shalt.err (!%p589_p4)
}
   0xc   :  { %19 = dma.hbm_to_vmem [thread:$0]  %s679_s0, 128, %s17_s10, [#allocation3]  }
   0xd   :  { %s601_s16 = scalar_lea.vmem %s26_s12, 3328  ;;  %p606_p6 = scmp.lt.s32.totalorder %s26_s12, %s26_s12 }
   0xe   :  { %p602_p5 = scmp.ne.s32.totalorder %s26_s12, %s601_s16  ;;  %p607_p7 = scmp.lt.s32.totalorder %s601_s16, %s601_s16 }
  0x10   :  { %p608_p8 = por %p607_p7, %p606_p6 }
  0x12   :  { %p609_p9 = pnand %p608_p8, %p602_p5 }
  0x14   :  { %612 = shalt.err (!%p609_p9)
}
  0x15   :  { %s641_s17 = smov 128   ;;  %s642_s18 = smov 8  }
  0x16   :  { %31 = dma.hbm_to_vmem [thread:$0]  %s680_s1, 3328, %s26_s12, [#allocation6], %s641_s17, %s641_s17, %s642_s18  }
  0x17   :  { %633 = dma.done.wait [#allocation3], 128  }
  0x18   :  { %634 = vsyncadd [#allocation3], 4294967168 }
  0x19   :  { %635 = dma.done.wait [#allocation6], 3328  }
  0x1a   :  { %636 = vsyncadd [#allocation6], 4294963968  ;;  %vm65_vm0 = vcmask 64512   ;;  %v38_v0 = vld [vmem:[#allocation2] sm:$0xff]  ;;  %v39_v1 = vld [vmem:[#allocation5] sm:$0xff]  ;;  %vm167_vm1 = vcmask 261120  }
  0x1b   :  { %v40_v2 = vld [vmem:[#allocation5 + $0x8] sm:$0xff]  ;;  %515 = vmatprep.subr.mxu0 %v38_v0  ;;  %517 = vmatprep.mubr.msk.f32.mxu0 %vm65_vm0, %v39_v1  ;;  %v41_v3 = vld [vmem:[#allocation5 + $0x10] sm:$0xff]  ;;  %v42_v4 = vld [vmem:[#allocation5 + $0x18] sm:$0xff]  ;;  %v643_v45 = vmov 0.0   ;;  %vm644_vm2 = vmmov 0   ;;  %s645_s0 = smov [#allocation7]  }
  0x1c   :  { %516 = vmatpush3.msra.mxu0 %v38_v0  ;;  %v43_v5 = vld [vmem:[#allocation5 + $0x20] sm:$0xff]  ;;  %v53_v9 = vld [vmem:[#allocation5 + $0x70] sm:$0xff]  ;;  %v54_v11 = vld [vmem:[#allocation5 + $0x78] sm:$0xff]  ;;  %s466_s1 = sshll.u32 %s645_s0, 4  ;;  %vm457_vm3 = vcmask 1040384   ;;  %s467_s1 = int_to_ptr.vmem [resolvable:$true] %s466_s1 }
  0x1d   :  { %518 = vmatmul.mubr.msk.f32.vlgmr.msra.gmra.mxu0 %vm65_vm0, %v40_v2  ;;  %531 = vmatprep.mubr.msk.f32.mxu1 %vm167_vm1, %v43_v5  ;;  %v55_v8 = vld [vmem:[#allocation5 + $0x80] sm:$0xff]  ;;  %v52_v13 = vld [vmem:[#allocation5 + $0x68] sm:$0xff]  ;;  %v45_v23 = vld [vmem:[#allocation5 + $0x30] sm:$0xff]  ;;  %s613_s21 = scalar_lea.vmem %s467_s1, 32  ;;  %p618_p11 = scmp.lt.s32.totalorder %s467_s1, %s467_s1 }
  0x1e   :  { %520 = vmatprep.mubr.msk.f32.mxu0 %vm65_vm0, %v41_v3  ;;  %v44_v22 = vld [vmem:[#allocation5 + $0x28] sm:$0xff]  ;;  %v46_v24 = vld [vmem:[#allocation5 + $0x38] sm:$0xff]  ;;  %v47_v25 = vld [vmem:[#allocation5 + $0x40] sm:$0xff]  ;;  %p614_p10 = scmp.ne.s32.totalorder %s467_s1, %s613_s21  ;;  %p619_p12 = scmp.lt.s32.totalorder %s613_s21, %s613_s21 }
  0x1f   :  { %v59_v28 = vld [vmem:[#allocation5 + $0xa0] sm:$0xff]  ;;  %v57_v29 = vld [vmem:[#allocation5 + $0x90] sm:$0xff]  ;;  %v58_v31 = vld [vmem:[#allocation5 + $0x98] sm:$0xff] }
  0x20   :  { %v56_v33 = vld [vmem:[#allocation5 + $0x88] sm:$0xff]  ;;  %v49_v43 = vld [vmem:[#allocation5 + $0x50] sm:$0xff]  ;;  %v50_v44 = vld [vmem:[#allocation5 + $0x58] sm:$0xff]  ;;  %p620_p13 = por %p619_p12, %p618_p11 }
  0x21   :  { %521 = vmatmul.mubr.msk.f32.gmra.mxu0 %vm65_vm0, %v42_v4  ;;  %v48_v42 = vld [vmem:[#allocation5 + $0x48] sm:$0xff]  ;;  %v63_v48 = vld [vmem:[#allocation5 + $0xc0] sm:$0xff]  ;;  %v61_v49 = vld [vmem:[#allocation5 + $0xb0] sm:$0xff] }
  0x22   :  { %545 = vmatprep.mubr.msk.f32.mxu0 %vm167_vm1, %v47_v25  ;;  %v62_v51 = vld [vmem:[#allocation5 + $0xb8] sm:$0xff]  ;;  %v60_v53 = vld [vmem:[#allocation5 + $0xa8] sm:$0xff]  ;;  %v51_v62 = vld [vmem:[#allocation5 + $0x60] sm:$0xff]  ;;  %p621_p0 = pnand %p620_p13, %p614_p10 }
  0x23   :  { %v64_v63 = vld [vmem:[#allocation5 + $0xc8] sm:$0xff] }
  0xdd   :  { %v519_v6 = vpop.f32.mrf.mxu0 }
  0xde   :  { %v150_v15 = vadd.f32 %v519_v6, %v53_v9 }
  0xdf   :  { %v144_v7 = vpop.f32.mrf.mxu0 }
  0xe0   :  { %v145_v18 = vadd.f32 %v144_v7, %v52_v13  ;;  %v164_v20 = vmax.f32 %v150_v15, 0.0 }
  0xe1   :  { %v522_v10 = vpop.f32.mrf.mxu0 }
  0xe2   :  { %v160_v12 = vadd.f32 %v522_v10, %v55_v8  ;;  %v163_v21 = vmax.f32 %v145_v18, 0.0 }
  0xe3   :  { %v154_v14 = vpop.f32.mrf.mxu0 }
  0xe4   :  { %v166_v16 = vmax.f32 %v160_v12, 0.0  ;;  %v155_v17 = vadd.f32 %v154_v14, %v54_v11 }
  0xe6   :  { %v165_v19 = vmax.f32 %v155_v17, 0.0  ;;  %523 = vmatprep.subr.mxu1 %v166_v16 }
  0xe7   :  { %524 = vmatpush3.msra.mxu1 %v166_v16 }
  0xe8   :  { %525 = vmatprep.subr.mxu1 %v165_v19 }
  0xe9   :  { %526 = vmatpush3.msra.mxu1 %v165_v19 }
  0xea   :  { %527 = vmatprep.subr.mxu1 %v164_v20 }
  0xeb   :  { %528 = vmatpush3.msra.mxu1 %v164_v20 }
  0xec   :  { %529 = vmatprep.subr.mxu1 %v163_v21 }
  0xed   :  { %530 = vmatpush3.msra.mxu1 %v163_v21 }
  0xee   :  { %532 = vmatmul.mubr.msk.f32.vlgmr.msra.gmra.mxu1 %vm167_vm1, %v44_v22  ;;  %551 = vmatprep.subr.mxu1 %v643_v45 }
  0xef   :  { %534 = vmatprep.mubr.msk.f32.mxu1 %vm167_vm1, %v45_v23 }
  0xf2   :  { %535 = vmatmul.mubr.msk.f32.gmra.mxu1 %vm167_vm1, %v46_v24 }
  0xf3   :  { %559 = vmatprep.mubr.msk.f32.mxu1 %vm644_vm2, %v643_v45 }
 0x1ae   :  { %v533_v26 = vpop.f32.mrf.mxu1 }
 0x1af   :  { %v252_v35 = vadd.f32 %v533_v26, %v57_v29 }
 0x1b0   :  { %v246_v27 = vpop.f32.mrf.mxu1 }
 0x1b1   :  { %v247_v38 = vadd.f32 %v246_v27, %v56_v33  ;;  %v266_v40 = vmax.f32 %v252_v35, 0.0 }
 0x1b2   :  { %v536_v30 = vpop.f32.mrf.mxu1 }
 0x1b3   :  { %v262_v32 = vadd.f32 %v536_v30, %v59_v28  ;;  %v265_v41 = vmax.f32 %v247_v38, 0.0 }
 0x1b4   :  { %v256_v34 = vpop.f32.mrf.mxu1 }
 0x1b5   :  { %v268_v36 = vmax.f32 %v262_v32, 0.0  ;;  %v257_v37 = vadd.f32 %v256_v34, %v58_v31 }
 0x1b7   :  { %v267_v39 = vmax.f32 %v257_v37, 0.0  ;;  %537 = vmatprep.subr.mxu0 %v268_v36 }
 0x1b8   :  { %538 = vmatpush3.msra.mxu0 %v268_v36 }
 0x1b9   :  { %539 = vmatprep.subr.mxu0 %v267_v39 }
 0x1ba   :  { %540 = vmatpush3.msra.mxu0 %v267_v39 }
 0x1bb   :  { %541 = vmatprep.subr.mxu0 %v266_v40 }
 0x1bc   :  { %542 = vmatpush3.msra.mxu0 %v266_v40 }
 0x1bd   :  { %543 = vmatprep.subr.mxu0 %v265_v41 }
 0x1be   :  { %544 = vmatpush3.msra.mxu0 %v265_v41 }
 0x1bf   :  { %546 = vmatmul.mubr.msk.f32.vlgmr.msra.gmra.mxu0 %vm167_vm1, %v48_v42 }
 0x1c0   :  { %548 = vmatprep.mubr.msk.f32.mxu0 %vm167_vm1, %v49_v43 }
 0x1c3   :  { %549 = vmatmul.mubr.msk.f32.gmra.mxu0 %vm167_vm1, %v50_v44 }
 0x27f   :  { %v547_v46 = vpop.f32.mrf.mxu0 }
 0x280   :  { %v353_v55 = vadd.f32 %v547_v46, %v61_v49 }
 0x281   :  { %v347_v47 = vpop.f32.mrf.mxu0 }
 0x282   :  { %v348_v58 = vadd.f32 %v347_v47, %v60_v53  ;;  %v367_v60 = vmax.f32 %v353_v55, 0.0 }
 0x283   :  { %v550_v50 = vpop.f32.mrf.mxu0 }
 0x284   :  { %v363_v52 = vadd.f32 %v550_v50, %v63_v48  ;;  %v366_v61 = vmax.f32 %v348_v58, 0.0 }
 0x285   :  { %v357_v54 = vpop.f32.mrf.mxu0 }
 0x286   :  { %v369_v56 = vmax.f32 %v363_v52, 0.0  ;;  %v358_v57 = vadd.f32 %v357_v54, %v62_v51 }
 0x288   :  { %v368_v59 = vmax.f32 %v358_v57, 0.0  ;;  %552 = vmatpush3.msra.mxu1 %v369_v56 }
 0x289   :  { %553 = vmatprep.subr.mxu1 %v643_v45 }
 0x28a   :  { %554 = vmatpush3.msra.mxu1 %v368_v59 }
 0x28b   :  { %555 = vmatprep.subr.mxu1 %v643_v45 }
 0x28c   :  { %556 = vmatpush3.msra.mxu1 %v367_v60 }
 0x28d   :  { %557 = vmatprep.subr.mxu1 %v643_v45 }
 0x28e   :  { %558 = vmatpush3.msra.mxu1 %v366_v61 }
 0x28f   :  { %560 = vmatmul.mubr.msk.f32.vlgmr.msra.gmra.mxu1 %vm167_vm1, %v51_v62 }
 0x34f   :  { %v439_v0 = vpop.f32.mrf.mxu1 }
 0x350   :  { %v440_v1 = vadd.f32 %v439_v0, %v64_v63 }
 0x351   :  { %v561_v2 = vpop.f32.mrf.mxu1 }
 0x352   :  { %v444_v3 = vrot.slane %v440_v1, 1 }
 0x354   :  { %v446_v4 = vsub.f32 %v440_v1, %v444_v3 }
 0x356   :  { %v447_v5 = vsub.f32 0.0, %v446_v4 }
 0x358   :  { %v448_v6 = vmul.f32 1.442695, %v447_v5 }
 0x35a   :  { %569 = vpow2.f32 %v448_v6 }
 0x367   :  { %v570_v7 = vpop.eup %569 }
 0x368   :  { %v450_v8 = vadd.f32 1.0, %v570_v7 }
 0x36a   :  { %571 = vrcp.f32 %v450_v8 }
 0x377   :  { %v572_v9 = vpop.eup %571 }
 0x378   :  { %v453_v10 = vsub.f32 1.0, %v572_v9 }
 0x37a   :  { %v455_v11 = vrot.slane %v453_v10, 7 }
 0x37c   :  { %v458_v12 = vsel %vm457_vm3, %v572_v9, %v455_v11 }
 0x37d   :  { %459 = vst [vmem:[#allocation7] sm:$0x3] %v458_v12 }
 0x37e   :  { %624 = shalt.err (!%p621_p0)
}
 0x37f   :  { %469 = dma.vmem_to_hbm [thread:$0]  %s467_s1, 32, %s681_s2, [#allocation4]  }
 0x380   :  { %637 = dma.done.wait [#allocation4], 32  }
 0x381   :  { %638 = vsyncadd [#allocation4], 4294967264 }
 0x382   :  { %473 = vsyncpa [#allocation3], 1 }
 0x383   :  { %474 = vsyncpa [#allocation6], 1 }
 0x384   :  { %475 = vsyncpa [#allocation4], 1 }

</bundles_post_ra>
